<compile_context>
chip_gen: v5e
topology: v5e:2x2
jax: 0.10.0
libtpu: 0.0.40
codegen_flags: <defaults>
</compile_context>

<pallas_src>
import functools

import jax
import jax.numpy as jnp
from jax.experimental import pallas as pl
from jax.experimental.pallas import tpu as pltpu


def _round_up(x, m):
    return ((x + m - 1) // m) * m


def _mlp_kernel(x_ref, w1_ref, b1_ref, w2_ref, b2_ref, w3_ref, b3_ref, o_ref,
                *, out_logsoftmax):
    # Whole hot path (3 MXU matmuls + ReLUs + log-softmax) lives in-kernel.
    compute_dtype = x_ref.dtype  # bf16 matmul operands, f32 everywhere else

    # Layer 1: (tile_b, D_in) @ (D_in, H) on the MXU, f32 accumulation.
    h1 = jnp.dot(x_ref[...], w1_ref[...], preferred_element_type=jnp.float32)
    h1 = jnp.maximum(h1 + b1_ref[...], 0.0)            # f32 bias + ReLU (VPU)

    h2 = jnp.dot(h1.astype(compute_dtype), w2_ref[...],
                 preferred_element_type=jnp.float32)
    h2 = jnp.maximum(h2 + b2_ref[...], 0.0)

    logits = jnp.dot(h2.astype(compute_dtype), w3_ref[...],
                     preferred_element_type=jnp.float32) + b3_ref[...]

    if out_logsoftmax:
        # Stable log-softmax over the D_out real logits, all in f32.
        m = jnp.max(logits, axis=-1, keepdims=True)
        lse = jnp.log(jnp.sum(jnp.exp(logits - m), axis=-1, keepdims=True)) + m
        out = logits - lse
    else:
        out = logits

    o_ref[...] = out.astype(o_ref.dtype)


def simple_relu_network(x, params, *, out_logsoftmax=True, tile_b=2048,
                        compute_dtype=jnp.bfloat16):
    """x: (B, input_dims) float32.  params: dict of (w1,b1,w2,b2,w3,b3) with
    PyTorch Linear layout: w_i is (out_features, in_features), b_i is (out_features,)."""
    B, D_in = x.shape
    out_dtype = x.dtype

    # Glue: pre-transpose weights to (in, out) and cast matmul operands to bf16
    # (tiny + VMEM-resident); biases stay f32 as (1, out) rows.
    w1 = params["w1"].T.astype(compute_dtype)
    w2 = params["w2"].T.astype(compute_dtype)
    w3 = params["w3"].T.astype(compute_dtype)
    b1 = params["b1"][None, :].astype(jnp.float32)
    b2 = params["b2"][None, :].astype(jnp.float32)
    b3 = params["b3"][None, :].astype(jnp.float32)
    D_out = w3.shape[1]

    # For the full HBM saving the caller should feed bf16 x directly; this cast
    # is the fallback for the module's f32 interface.
    x = x.astype(compute_dtype)

    # Batch tile: as large as possible (amortise ~0.35us/step), capped at the
    # sublane-aligned batch so small problems run as a single grid step.
    tile_b = max(8, min(tile_b, _round_up(B, 8)))
    tile_b = _round_up(tile_b, 8)
    B_pad = _round_up(B, tile_b)
    if B_pad != B:
        x = jnp.pad(x, ((0, B_pad - B), (0, 0)))  # zero rows -> sliced off below

    kernel = functools.partial(_mlp_kernel, out_logsoftmax=out_logsoftmax)
    resident = lambda arr: pl.BlockSpec(arr.shape, lambda i: (0,) * arr.ndim)

    out = pl.pallas_call(
        kernel,
        out_shape=jax.ShapeDtypeStruct((B_pad, D_out), out_dtype),
        grid_spec=pl.GridSpec(
            grid=(B_pad // tile_b,),
            in_specs=[
                pl.BlockSpec((tile_b, D_in), lambda i: (i, 0)),   # x tile
                resident(w1), resident(b1),
                resident(w2), resident(b2),
                resident(w3), resident(b3),
            ],
            out_specs=pl.BlockSpec((tile_b, D_out), lambda i: (i, 0)),
        ),
        compiler_params=pltpu.CompilerParams(
            # Batch axis is embarrassingly parallel -> shards across v7x's 2 TCs.
            dimension_semantics=("parallel",)),
    )(x, w1, b1, w2, b2, w3, b3)

    return out[:B]


def _init_params(key, input_dims, output_dims, hidden_dims=(16,)):
    """Deterministic init mimicking PyTorch Linear default (U[-1/sqrt(fan_in), +])."""
    dims = [input_dims, hidden_dims[0]] + list(hidden_dims) + [output_dims]
    params = {}
    ks = jax.random.split(key, 2 * (len(dims) - 1))
    for li in range(len(dims) - 1):
        fan_in, fan_out = dims[li], dims[li + 1]
        bound = 1.0 / jnp.sqrt(jnp.float32(fan_in))
        w = jax.random.uniform(ks[2 * li], (fan_out, fan_in), jnp.float32, -bound, bound)
        b = jax.random.uniform(ks[2 * li + 1], (fan_out,), jnp.float32, -bound, bound)
        params[f"w{li + 1}"] = w
        params[f"b{li + 1}"] = b
    return params


def _reference_f32(x, params, out_logsoftmax=True):
    h = jnp.maximum(x @ params["w1"].T + params["b1"], 0.0)
    h = jnp.maximum(h @ params["w2"].T + params["b2"], 0.0)
    logits = h @ params["w3"].T + params["b3"]
    return jax.nn.log_softmax(logits, axis=-1) if out_logsoftmax else logits


def _reference_bf16(x, params, out_logsoftmax=True):
    """Reference matching the kernel's numerics: bf16 matmul operands, f32 accum."""
    bf = jnp.bfloat16

    def lin(h, w, b):
        return jnp.dot(h.astype(bf), w.T.astype(bf),
                       preferred_element_type=jnp.float32) + b

    h = jnp.maximum(lin(x, params["w1"], params["b1"]), 0.0)
    h = jnp.maximum(lin(h, params["w2"], params["b2"]), 0.0)
    logits = lin(h, params["w3"], params["b3"])
    return jax.nn.log_softmax(logits, axis=-1) if out_logsoftmax else logits


if __name__ == "__main__":
    key = jax.random.PRNGKey(0)
    k_x, k_x2, k_p = jax.random.split(key, 3)

    input_dims, output_dims = 32, 8
    params = _init_params(k_p, input_dims, output_dims, hidden_dims=(16,))

    # Small case: single grid step covers the whole (padded) batch.
    B = 8
    x = jax.random.normal(k_x, (B, input_dims), jnp.float32)
    out = jax.block_until_ready(simple_relu_network(x, params, out_logsoftmax=True))
    assert out.shape == (B, output_dims)
    assert jnp.allclose(out, _reference_bf16(x, params), atol=2e-3, rtol=2e-3), \
        "mismatch vs bf16-matched reference"
    assert jnp.allclose(out, _reference_f32(x, params), atol=5e-2, rtol=5e-2), \
        "mismatch vs f32 reference"

    # Larger, non-multiple batch: exercises zero-padding and the multi-step
    # "parallel" grid (tile_b=2048 -> 2 steps -> both v7x TensorCores).
    B2 = 3000
    x2 = jax.random.normal(k_x2, (B2, input_dims), jnp.float32)
    out2 = jax.block_until_ready(simple_relu_network(x2, params, out_logsoftmax=True))
    assert out2.shape == (B2, output_dims)
    assert jnp.allclose(out2, _reference_bf16(x2, params), atol=2e-3, rtol=2e-3), \
        "mismatch vs bf16-matched reference (large batch)"

    print("KERNEL_OK")
</pallas_src>

<mosaic_0001>
module attributes {stable_mosaic.version = 11 : i64} {
  func.func @_mlp_kernel(%arg0: i32, %arg1: memref<8x32xbf16, #tpu.memory_space<vmem>>, %arg2: memref<32x16xbf16, #tpu.memory_space<vmem>>, %arg3: memref<1x16xf32, #tpu.memory_space<vmem>>, %arg4: memref<16x16xbf16, #tpu.memory_space<vmem>>, %arg5: memref<1x16xf32, #tpu.memory_space<vmem>>, %arg6: memref<16x8xbf16, #tpu.memory_space<vmem>>, %arg7: memref<1x8xf32, #tpu.memory_space<vmem>>, %arg8: memref<8x8xf32, #tpu.memory_space<vmem>>) attributes {dimension_semantics = [#tpu.dimension_semantics<parallel>], iteration_bounds = array<i64: 1>, scalar_prefetch = 0 : i64, scratch_operands = 0 : i64, tpu.core_type = #tpu.core_type<tc>, window_params = [{transform_indices = @transform_0, window_bounds = array<i64: 8, 32>}, {pipeline_mode = #tpu.pipeline_mode<synchronous>, transform_indices = @transform_1, window_bounds = array<i64: 32, 16>}, {pipeline_mode = #tpu.pipeline_mode<synchronous>, transform_indices = @transform_2, window_bounds = array<i64: 1, 16>}, {pipeline_mode = #tpu.pipeline_mode<synchronous>, transform_indices = @transform_3, window_bounds = array<i64: 16, 16>}, {pipeline_mode = #tpu.pipeline_mode<synchronous>, transform_indices = @transform_4, window_bounds = array<i64: 1, 16>}, {pipeline_mode = #tpu.pipeline_mode<synchronous>, transform_indices = @transform_5, window_bounds = array<i64: 16, 8>}, {pipeline_mode = #tpu.pipeline_mode<synchronous>, transform_indices = @transform_6, window_bounds = array<i64: 1, 8>}, {transform_indices = @transform_7, window_bounds = array<i64: 8, 8>}]} {
    %c0 = arith.constant 0 : index
    %c0_0 = arith.constant 0 : index
    %0 = vector.load %arg1[%c0, %c0_0] : memref<8x32xbf16, #tpu.memory_space<vmem>>, vector<8x32xbf16>
    %c0_1 = arith.constant 0 : index
    %c0_2 = arith.constant 0 : index
    %1 = vector.load %arg2[%c0_1, %c0_2] : memref<32x16xbf16, #tpu.memory_space<vmem>>, vector<32x16xbf16>
    %cst = arith.constant dense<0.000000e+00> : vector<8x16xf32>
    %2 = tpu.matmul %0, %1, %cst {dimension_numbers = #tpu.dot_dimension_numbers<[1], [0], [0], [1], [0, 0, 1, 1], [], []>} : vector<8x32xbf16>, vector<32x16xbf16>, vector<8x16xf32> -> vector<8x16xf32>
    %c0_3 = arith.constant 0 : index
    %c0_4 = arith.constant 0 : index
    %3 = vector.load %arg3[%c0_3, %c0_4] : memref<1x16xf32, #tpu.memory_space<vmem>>, vector<1x16xf32>
    %4 = vector.broadcast %3 : vector<1x16xf32> to vector<8x16xf32>
    %5 = arith.addf %2, %4 : vector<8x16xf32>
    %cst_5 = arith.constant 0.000000e+00 : f32
    %6 = vector.broadcast %cst_5 : f32 to vector<8x16xf32>
    %7 = arith.maximumf %5, %6 : vector<8x16xf32>
    %8 = arith.truncf %7 : vector<8x16xf32> to vector<8x16xbf16>
    %c0_6 = arith.constant 0 : index
    %c0_7 = arith.constant 0 : index
    %9 = vector.load %arg4[%c0_6, %c0_7] : memref<16x16xbf16, #tpu.memory_space<vmem>>, vector<16x16xbf16>
    %cst_8 = arith.constant dense<0.000000e+00> : vector<8x16xf32>
    %10 = tpu.matmul %8, %9, %cst_8 {dimension_numbers = #tpu.dot_dimension_numbers<[1], [0], [0], [1], [0, 0, 1, 1], [], []>} : vector<8x16xbf16>, vector<16x16xbf16>, vector<8x16xf32> -> vector<8x16xf32>
    %c0_9 = arith.constant 0 : index
    %c0_10 = arith.constant 0 : index
    %11 = vector.load %arg5[%c0_9, %c0_10] : memref<1x16xf32, #tpu.memory_space<vmem>>, vector<1x16xf32>
    %12 = vector.broadcast %11 : vector<1x16xf32> to vector<8x16xf32>
    %13 = arith.addf %10, %12 : vector<8x16xf32>
    %cst_11 = arith.constant 0.000000e+00 : f32
    %14 = vector.broadcast %cst_11 : f32 to vector<8x16xf32>
    %15 = arith.maximumf %13, %14 : vector<8x16xf32>
    %16 = arith.truncf %15 : vector<8x16xf32> to vector<8x16xbf16>
    %c0_12 = arith.constant 0 : index
    %c0_13 = arith.constant 0 : index
    %17 = vector.load %arg6[%c0_12, %c0_13] : memref<16x8xbf16, #tpu.memory_space<vmem>>, vector<16x8xbf16>
    %cst_14 = arith.constant dense<0.000000e+00> : vector<8x8xf32>
    %18 = tpu.matmul %16, %17, %cst_14 {dimension_numbers = #tpu.dot_dimension_numbers<[1], [0], [0], [1], [0, 0, 1, 1], [], []>} : vector<8x16xbf16>, vector<16x8xbf16>, vector<8x8xf32> -> vector<8x8xf32>
    %c0_15 = arith.constant 0 : index
    %c0_16 = arith.constant 0 : index
    %19 = vector.load %arg7[%c0_15, %c0_16] : memref<1x8xf32, #tpu.memory_space<vmem>>, vector<1x8xf32>
    %20 = vector.broadcast %19 : vector<1x8xf32> to vector<8x8xf32>
    %21 = arith.addf %18, %20 : vector<8x8xf32>
    %cst_17 = arith.constant dense<0xFF800000> : vector<8xf32>
    %22 = vector.multi_reduction <maximumf>, %21, %cst_17 [1] : vector<8x8xf32> to vector<8xf32>
    %23 = vector.shape_cast %22 : vector<8xf32> to vector<8x1xf32>
    %24 = vector.broadcast %23 : vector<8x1xf32> to vector<8x8xf32>
    %25 = arith.subf %21, %24 : vector<8x8xf32>
    %26 = math.exp %25 : vector<8x8xf32>
    %cst_18 = arith.constant dense<0.000000e+00> : vector<8xf32>
    %27 = vector.multi_reduction <add>, %26, %cst_18 [1] : vector<8x8xf32> to vector<8xf32>
    %28 = vector.shape_cast %27 : vector<8xf32> to vector<8x1xf32>
    %29 = math.log %28 : vector<8x1xf32>
    %30 = arith.addf %29, %23 : vector<8x1xf32>
    %31 = vector.broadcast %30 : vector<8x1xf32> to vector<8x8xf32>
    %32 = arith.subf %21, %31 : vector<8x8xf32>
    %c0_19 = arith.constant 0 : index
    %c0_20 = arith.constant 0 : index
    %33 = vector.load %arg8[%c0_19, %c0_20] : memref<8x8xf32, #tpu.memory_space<vmem>>, vector<8x8xf32>
    tpu.vector_store %arg8[%c0_19, %c0_20], %32 {strides = array<i32>} : memref<8x8xf32, #tpu.memory_space<vmem>>, vector<8x8xf32>,
    return
  }
  func.func @transform_0(%arg0: i32) -> (i32, i32) {
    %c0_i32 = arith.constant 0 : i32
    %c0_i32_0 = arith.constant 0 : i32
    return %arg0, %c0_i32 : i32, i32
  }
  func.func @transform_1(%arg0: i32) -> (i32, i32) {
    %c0_i32 = arith.constant 0 : i32
    %c0_i32_0 = arith.constant 0 : i32
    %c0_i32_1 = arith.constant 0 : i32
    return %c0_i32, %c0_i32_0 : i32, i32
  }
  func.func @transform_2(%arg0: i32) -> (i32, i32) {
    %c0_i32 = arith.constant 0 : i32
    %c0_i32_0 = arith.constant 0 : i32
    %c0_i32_1 = arith.constant 0 : i32
    return %c0_i32, %c0_i32_0 : i32, i32
  }
  func.func @transform_3(%arg0: i32) -> (i32, i32) {
    %c0_i32 = arith.constant 0 : i32
    %c0_i32_0 = arith.constant 0 : i32
    %c0_i32_1 = arith.constant 0 : i32
    return %c0_i32, %c0_i32_0 : i32, i32
  }
  func.func @transform_4(%arg0: i32) -> (i32, i32) {
    %c0_i32 = arith.constant 0 : i32
    %c0_i32_0 = arith.constant 0 : i32
    %c0_i32_1 = arith.constant 0 : i32
    return %c0_i32, %c0_i32_0 : i32, i32
  }
  func.func @transform_5(%arg0: i32) -> (i32, i32) {
    %c0_i32 = arith.constant 0 : i32
    %c0_i32_0 = arith.constant 0 : i32
    %c0_i32_1 = arith.constant 0 : i32
    return %c0_i32, %c0_i32_0 : i32, i32
  }
  func.func @transform_6(%arg0: i32) -> (i32, i32) {
    %c0_i32 = arith.constant 0 : i32
    %c0_i32_0 = arith.constant 0 : i32
    %c0_i32_1 = arith.constant 0 : i32
    return %c0_i32, %c0_i32_0 : i32, i32
  }
  func.func @transform_7(%arg0: i32) -> (i32, i32) {
    %c0_i32 = arith.constant 0 : i32
    %c0_i32_0 = arith.constant 0 : i32
    return %arg0, %c0_i32 : i32, i32
  }
}

</mosaic_0001>

<bundles_post_ra>
// kernel: tpu_custom_call.1
= control target key start
LH: loop header
LB: loop body
LE: loop exit
PB: predicated region body
PF: predicated region fallthrough
CT: control target
= control target key end

     0   :  { %s286_s0 = inlined_call_operand.vmem [shape: bf16[8,32], index: 0, kind: input, shape index: {}]   ;;  %s287_s1 = inlined_call_operand.vmem [shape: bf16[32,16], index: 1, kind: input, shape index: {}]   ;;  %s288_s2 = inlined_call_operand.vmem [shape: f32[1,16], index: 2, kind: input, shape index: {}]   ;;  %s289_s3 = inlined_call_operand.vmem [shape: bf16[16,16], index: 3, kind: input, shape index: {}]   ;;  %s290_s4 = inlined_call_operand.vmem [shape: f32[1,16], index: 4, kind: input, shape index: {}]   ;;  %s291_s5 = inlined_call_operand.vmem [shape: bf16[16,8], index: 5, kind: input, shape index: {}]   ;;  %s292_s6 = inlined_call_operand.vmem [shape: f32[1,8], index: 6, kind: input, shape index: {}]   ;;  %s293_s7 = inlined_call_operand.hbm [shape: f32[8,8], index: 7, kind: output, shape index: {}]  }
   0x1   :  { %v178_v0 = vld [vmem:[%s287_s1 + $0x8] sm:$0xff]  ;;  %v177_v1 = vld [vmem:[%s287_s1] sm:$0xff] }
   0x2   :  { %59 = vmatpush.bf16.msra.mxu0 %v178_v0 }
   0x3   :  { %12 = vsyncpa [#allocation3], 0  ;;  %v28_v2 = vld [vmem:[%s286_s0] sm:$0xf]  ;;  %vm49_vm0 = vcmask 261120   ;;  %vm80_vm1 = vcmask 130048  }
   0x4   :  { %v179_v3 = vld [vmem:[%s289_s3] sm:$0xff]  ;;  %vm127_vm2 = vcmask 64512   ;;  %s149_s14 = sshll.u32 %s293_s7, 4  ;;  %s150_s14 = int_to_ptr.hbm [resolvable:$true] %s149_s14 }
   0x5   :  { %91 = vmatpush.bf16.msra.mxu1 %v179_v3  ;;  %v182_v4 = vld [vmem:[%s288_s2] ss:$0 sm:$0xff] }
   0x6   :  { %60 = vmatpush.bf16.msra.mxu0 %v177_v1  ;;  %v180_v10 = vld [vmem:[%s291_s5] sm:$0xff] }
   0x7   :  { %121 = vmatpush.bf16.msra.mxu2 %v180_v10  ;;  %v183_v11 = vld [vmem:[%s290_s4] ss:$0 sm:$0xff]  ;;  %s215_s4 = smov [#allocation2]  }
   0x8   :  { %v184_v17 = vld [vmem:[%s292_s6] ss:$0 sm:$0xff]  ;;  %s147_s5 = sshll.u32 %s215_s4, 4  ;;  %s148_s5 = int_to_ptr.vmem [resolvable:$true] %s147_s5 }
   0x9   :  { %166 = vmatmul.msk.bf16.vlgmr.msra.gmra.mxu0 %vm49_vm0, %v28_v2 }
  0x86   :  { %v62_v5 = vpop.f32.mrf.mxu0 }
  0x87   :  { %v63_v6 = vadd.f32 %v182_v4, %v62_v5 }
  0x89   :  { %v66_v7 = vmax.f32 %v63_v6, 0.0 }
  0x8b   :  { %v67_v8 = vpack.c.bf16 %v66_v7, %v66_v7 }
  0x8d   :  { %171 = vmatmul.msk.bf16.vlgmr.msra.gmra.mxu1 %vm80_vm1, %v67_v8 }
  0x8e   :  { %v64_v9 = vpop.f32.mrf.mxu0 }
 0x10a   :  { %v93_v12 = vpop.f32.mrf.mxu1 }
 0x10b   :  { %v94_v13 = vadd.f32 %v183_v11, %v93_v12 }
 0x10d   :  { %v97_v14 = vmax.f32 %v94_v13, 0.0 }
 0x10f   :  { %v98_v15 = vpack.c.bf16 %v97_v14, %v97_v14 }
 0x111   :  { %176 = vmatmul.msk.bf16.vlgmr.msra.gmra.mxu2 %vm80_vm1, %v98_v15 }
 0x112   :  { %v95_v16 = vpop.f32.mrf.mxu1 }
 0x194   :  { %v123_v18 = vpop.f32.mrf.mxu2 }
 0x195   :  { %v124_v19 = vadd.f32 %v184_v17, %v123_v18 }
 0x197   :  { %v128_v20 = vsel %vm127_vm2, %v124_v19, -inf }
 0x198   :  { %129 = vmax.xlane.f32.xlu0 %v128_v20 }
 0x19c   :  { %v125_v21 = vpop.f32.mrf.mxu2 }
 0x20b   :  { %v130_v22 = vpop.xlane.xlu0 %129 }
 0x20c   :  { %v131_v23 = vsub.f32 %v124_v19, %v130_v22 }
 0x20e   :  { %v132_v24 = vmul.f32 1.442695, %v131_v23 }
 0x210   :  { %185 = vpow2.f32 %v132_v24 }
 0x216   :  { %v186_v25 = vpop.eup %185 }
 0x217   :  { %v134_v26 = vsel %vm127_vm2, %v186_v25, 0.0 }
 0x218   :  { %135 = vadd.xlane.f32.xlu0 %v134_v26 }
 0x28b   :  { %v136_v27 = vpop.xlane.xlu0 %135 }
 0x28c   :  { %187 = vlog2.f32 %v136_v27 }
 0x292   :  { %v188_v28 = vpop.eup %187 }
 0x293   :  { %v138_v29 = vmul.f32 0.6931472, %v188_v28 }
 0x295   :  { %v139_v30 = vadd.f32 %v138_v29, %v130_v22 }
 0x297   :  { %v140_v31 = vsub.f32 %v124_v19, %v139_v30 }
 0x299   :  { %141 = vst.msk [vmem:[#allocation2] sm:$0xff] %vm127_vm2, %v140_v31 }
 0x29a   :  { %152 = dma.vmem_to_hbm [thread:$0]  %s148_s5, 128, %s150_s14, [#allocation3]  }
 0x29b   :  { %213 = dma.done.wait [#allocation3], 128  }
 0x29c   :  { %214 = vsyncadd [#allocation3], 4294967168 }
 0x29d   :  { %157 = vsyncpa [#allocation3], 1 }

</bundles_post_ra>
